<compile_context>
chip_gen: v7x
topology: tpu7x:2x2x1
jax: 0.10.0
libtpu: 0.0.40
codegen_flags: <defaults>
</compile_context>

<pallas_src>
import jax
import jax.numpy as jnp
from jax.experimental import pallas as pl
from jax.experimental.pallas import tpu as pltpu

IN_FEATURES = 22
HIDDEN = 256
OUT_FEATURES = 7
K_PAD = 32      # first-layer contraction dim, padded inside the kernel
OUT_PAD = 8     # logits lane width (== full array dim -> legal, tiny writeback)
SUBLANE = 8     # f32 sublane granularity for the batch tile


def _round_up(n, m):
    return ((n + m - 1) // m) * m


def _use_bf16_epilogue():
    # bf16 VPU exists on v6e / v7x; keep the f32 elementwise path elsewhere (v5e etc).
    try:
        kind = jax.devices()[0].device_kind.lower()
    except Exception:
        return False
    return ("v6" in kind) or ("v7" in kind)


def _make_kernel(hidden_dtype):
    def mlp_kernel(x_ref, w1_ref, b1_ref, w2_ref, b2_ref, w3_ref, b3_ref,
                   w4_ref, b4_ref, o_ref):
        # x_ref: [TB, 22] f32 straight from HBM (no wrapper pad pass).
        # Zero-pad the contraction dim to 32 and cast to bf16 inside VMEM.
        x32 = x_ref[...]
        pad = jnp.zeros((x32.shape[0], K_PAD - IN_FEATURES), jnp.float32)
        x = jnp.concatenate([x32, pad], axis=-1).astype(jnp.bfloat16)

        h = jnp.dot(x, w1_ref[...], preferred_element_type=hidden_dtype)
        h = jnp.maximum(h + b1_ref[...], 0).astype(jnp.bfloat16)

        h = jnp.dot(h, w2_ref[...], preferred_element_type=hidden_dtype)
        h = jnp.maximum(h + b2_ref[...], 0).astype(jnp.bfloat16)

        h = jnp.dot(h, w3_ref[...], preferred_element_type=hidden_dtype)
        h = jnp.maximum(h + b3_ref[...], 0).astype(jnp.bfloat16)

        # Final layer: f32 accumulation, f32 bias-add, f32 logits.
        out = jnp.dot(h, w4_ref[...], preferred_element_type=jnp.float32)
        o_ref[...] = out + b4_ref[...]

    return mlp_kernel


def classifier_forward(x, params, *, block_b=2048):
    """x: [B, 22] float32; params: 4x (W[in,out], b[1,out]) float32."""
    (w1, b1), (w2, b2), (w3, b3), (w4, b4) = params
    B = x.shape[0]

    hidden_dtype = jnp.bfloat16 if _use_bf16_epilogue() else jnp.float32

    # ---- batch tile: sublane-granular, >=2 grid steps when B allows --------
    block_b = max(SUBLANE, _round_up(block_b, SUBLANE))
    TB = min(block_b, _round_up(B, SUBLANE))
    if B > SUBLANE and pl.cdiv(B, TB) < 2:
        # Split into at least two tiles so v7x's two TensorCores both get work.
        TB = _round_up(pl.cdiv(B, 2), SUBLANE)
    grid = (pl.cdiv(B, TB),)

    # ---- one-time weight prep (tiny arrays, negligible HBM traffic) --------
    w1_p = jnp.zeros((K_PAD, HIDDEN), jnp.bfloat16)
    w1_p = w1_p.at[:IN_FEATURES, :].set(w1.astype(jnp.bfloat16))
    w2_b = w2.astype(jnp.bfloat16)
    w3_b = w3.astype(jnp.bfloat16)
    w4_p = jnp.zeros((HIDDEN, OUT_PAD), jnp.bfloat16)
    w4_p = w4_p.at[:, :OUT_FEATURES].set(w4.astype(jnp.bfloat16))

    b1_h = b1.astype(hidden_dtype)
    b2_h = b2.astype(hidden_dtype)
    b3_h = b3.astype(hidden_dtype)
    b4_p = jnp.zeros((1, OUT_PAD), jnp.float32).at[:, :OUT_FEATURES].set(b4)

    # ---- specs --------------------------------------------------------------
    const = lambda i: (0, 0)            # weights/biases: resident, no re-DMA
    tiled = lambda i: (i, 0)            # activations: tiled along batch

    in_specs = [
        pl.BlockSpec((TB, IN_FEATURES), tiled),     # x (raw f32, 22 lanes)
        pl.BlockSpec((K_PAD, HIDDEN), const),       # w1 (padded, bf16)
        pl.BlockSpec((1, HIDDEN), const),           # b1
        pl.BlockSpec((HIDDEN, HIDDEN), const),      # w2
        pl.BlockSpec((1, HIDDEN), const),           # b2
        pl.BlockSpec((HIDDEN, HIDDEN), const),      # w3
        pl.BlockSpec((1, HIDDEN), const),           # b3
        pl.BlockSpec((HIDDEN, OUT_PAD), const),     # w4 (padded to 8 lanes)
        pl.BlockSpec((1, OUT_PAD), const),          # b4 (padded, f32)
    ]
    out_spec = pl.BlockSpec((TB, OUT_PAD), tiled)

    flops = 2 * B * (K_PAD * HIDDEN + 2 * HIDDEN * HIDDEN + HIDDEN * OUT_PAD)
    bytes_accessed = int(
        B * IN_FEATURES * 4                                     # x (f32)
        + (K_PAD * HIDDEN + 2 * HIDDEN * HIDDEN
           + HIDDEN * OUT_PAD) * 2                              # weights (bf16)
        + 3 * HIDDEN * jnp.dtype(hidden_dtype).itemsize         # hidden biases
        + OUT_PAD * 4                                           # b4 (f32)
        + B * OUT_PAD * 4                                       # output (f32)
    )

    out8 = pl.pallas_call(
        _make_kernel(hidden_dtype),
        out_shape=jax.ShapeDtypeStruct((B, OUT_PAD), jnp.float32),
        grid=grid,
        in_specs=in_specs,
        out_specs=out_spec,
        compiler_params=pltpu.CompilerParams(
            dimension_semantics=("parallel",),
            vmem_limit_bytes=32 * 1024 * 1024,
        ),
        cost_estimate=pl.CostEstimate(
            flops=flops, transcendentals=0, bytes_accessed=bytes_accessed),
    )(x, w1_p, b1_h, w2_b, b2_h, w3_b, b3_h, w4_p, b4_p)

    # Tiny slice: 32 B/row -> 28 B/row of useful logits.
    return out8[:, :OUT_FEATURES]


def init_linear(key, in_f, out_f):
    # Matches nn.Linear default init: U(-1/sqrt(in_f), 1/sqrt(in_f)).
    kw, kb = jax.random.split(key)
    bound = 1.0 / jnp.sqrt(jnp.float32(in_f))
    # Stored as [in_f, out_f] so the kernel computes x @ W directly
    # (equivalent to PyTorch's x @ W.T with W=[out_f, in_f]).
    w = jax.random.uniform(kw, (in_f, out_f), jnp.float32, -bound, bound)
    b = jax.random.uniform(kb, (1, out_f), jnp.float32, -bound, bound)
    return w, b


def _reference(x, params, hidden_dtype=None):
    """Pure-JAX reference. hidden_dtype=None -> full f32 (PyTorch-equivalent);
    otherwise mimics the kernel's bf16-operand / hidden_dtype-epilogue numerics."""
    h = x
    for i, (w, b) in enumerate(params):
        if hidden_dtype is None:
            h = h @ w + b
        else:
            acc = jnp.float32 if i == 3 else hidden_dtype
            h = jnp.dot(h.astype(jnp.bfloat16), w.astype(jnp.bfloat16),
                        preferred_element_type=acc)
            h = h + b.astype(acc)
        if i < 3:
            h = jnp.maximum(h, 0.0)
            if hidden_dtype is not None:
                h = h.astype(jnp.bfloat16)
    return h.astype(jnp.float32)


if __name__ == "__main__":
    key = jax.random.PRNGKey(0)
    k_x, k1, k2, k3, k4 = jax.random.split(key, 5)

    batch = 8
    x = jax.random.normal(k_x, (batch, IN_FEATURES), dtype=jnp.float32)

    params = (
        init_linear(k1, IN_FEATURES, HIDDEN),
        init_linear(k2, HIDDEN, HIDDEN),
        init_linear(k3, HIDDEN, HIDDEN),
        init_linear(k4, HIDDEN, OUT_FEATURES),
    )

    out = jax.block_until_ready(classifier_forward(x, params))
    assert out.shape == (batch, OUT_FEATURES)
    assert out.dtype == jnp.float32

    # Tight-ish check against a reference mimicking the kernel's numerics.
    hd = jnp.bfloat16 if _use_bf16_epilogue() else jnp.float32
    ref_mimic = _reference(x, params, hidden_dtype=hd)
    assert jnp.allclose(out, ref_mimic, atol=2e-2, rtol=2e-2), (
        jnp.max(jnp.abs(out - ref_mimic)))

    # Loose sanity check against the full-f32 PyTorch-equivalent forward
    # (bf16 matmul operands are an intentional precision tradeoff).
    ref_f32 = _reference(x, params)
    assert jnp.allclose(out, ref_f32, atol=7e-2, rtol=7e-2), (
        jnp.max(jnp.abs(out - ref_f32)))

    print("KERNEL_OK")
</pallas_src>

<mosaic_0001>
module attributes {stable_mosaic.version = 11 : i64} {
  func.func @mlp_kernel(%arg0: i32, %arg1: memref<8x22xf32, #tpu.memory_space<vmem>>, %arg2: memref<32x256xbf16, #tpu.memory_space<vmem>>, %arg3: memref<1x256xf32, #tpu.memory_space<vmem>>, %arg4: memref<256x256xbf16, #tpu.memory_space<vmem>>, %arg5: memref<1x256xf32, #tpu.memory_space<vmem>>, %arg6: memref<256x256xbf16, #tpu.memory_space<vmem>>, %arg7: memref<1x256xf32, #tpu.memory_space<vmem>>, %arg8: memref<256x8xbf16, #tpu.memory_space<vmem>>, %arg9: memref<1x8xf32, #tpu.memory_space<vmem>>, %arg10: memref<8x8xf32, #tpu.memory_space<vmem>>) attributes {dimension_semantics = [#tpu.dimension_semantics<parallel>], iteration_bounds = array<i64: 1>, scalar_prefetch = 0 : i64, scratch_operands = 0 : i64, tpu.core_type = #tpu.core_type<tc>, window_params = [{transform_indices = @transform_0, window_bounds = array<i64: 8, 22>}, {pipeline_mode = #tpu.pipeline_mode<synchronous>, transform_indices = @transform_1, window_bounds = array<i64: 32, 256>}, {pipeline_mode = #tpu.pipeline_mode<synchronous>, transform_indices = @transform_2, window_bounds = array<i64: 1, 256>}, {pipeline_mode = #tpu.pipeline_mode<synchronous>, transform_indices = @transform_3, window_bounds = array<i64: 256, 256>}, {pipeline_mode = #tpu.pipeline_mode<synchronous>, transform_indices = @transform_4, window_bounds = array<i64: 1, 256>}, {pipeline_mode = #tpu.pipeline_mode<synchronous>, transform_indices = @transform_5, window_bounds = array<i64: 256, 256>}, {pipeline_mode = #tpu.pipeline_mode<synchronous>, transform_indices = @transform_6, window_bounds = array<i64: 1, 256>}, {pipeline_mode = #tpu.pipeline_mode<synchronous>, transform_indices = @transform_7, window_bounds = array<i64: 256, 8>}, {pipeline_mode = #tpu.pipeline_mode<synchronous>, transform_indices = @transform_8, window_bounds = array<i64: 1, 8>}, {transform_indices = @transform_9, window_bounds = array<i64: 8, 8>}]} {
    %c0 = arith.constant 0 : index
    %c0_0 = arith.constant 0 : index
    %0 = vector.load %arg1[%c0, %c0_0] : memref<8x22xf32, #tpu.memory_space<vmem>>, vector<8x22xf32>
    %cst = arith.constant 0.000000e+00 : f32
    %1 = vector.broadcast %cst : f32 to vector<8x10xf32>
    %2 = tpu.concatenate %0, %1 in 1 : vector<8x22xf32>, vector<8x10xf32> -> vector<8x32xf32>
    %3 = arith.truncf %2 : vector<8x32xf32> to vector<8x32xbf16>
    %c0_1 = arith.constant 0 : index
    %c0_2 = arith.constant 0 : index
    %4 = vector.load %arg2[%c0_1, %c0_2] : memref<32x256xbf16, #tpu.memory_space<vmem>>, vector<32x256xbf16>
    %cst_3 = arith.constant dense<0.000000e+00> : vector<8x256xf32>
    %5 = tpu.matmul %3, %4, %cst_3 {dimension_numbers = #tpu.dot_dimension_numbers<[1], [0], [0], [1], [0, 0, 1, 1], [], []>} : vector<8x32xbf16>, vector<32x256xbf16>, vector<8x256xf32> -> vector<8x256xf32>
    %c0_4 = arith.constant 0 : index
    %c0_5 = arith.constant 0 : index
    %6 = vector.load %arg3[%c0_4, %c0_5] : memref<1x256xf32, #tpu.memory_space<vmem>>, vector<1x256xf32>
    %7 = vector.broadcast %6 : vector<1x256xf32> to vector<8x256xf32>
    %8 = arith.addf %5, %7 : vector<8x256xf32>
    %cst_6 = arith.constant 0.000000e+00 : f32
    %9 = vector.broadcast %cst_6 : f32 to vector<8x256xf32>
    %10 = arith.maximumf %8, %9 : vector<8x256xf32>
    %11 = arith.truncf %10 : vector<8x256xf32> to vector<8x256xbf16>
    %c0_7 = arith.constant 0 : index
    %c0_8 = arith.constant 0 : index
    %12 = vector.load %arg4[%c0_7, %c0_8] : memref<256x256xbf16, #tpu.memory_space<vmem>>, vector<256x256xbf16>
    %cst_9 = arith.constant dense<0.000000e+00> : vector<8x256xf32>
    %13 = tpu.matmul %11, %12, %cst_9 {dimension_numbers = #tpu.dot_dimension_numbers<[1], [0], [0], [1], [0, 0, 1, 1], [], []>} : vector<8x256xbf16>, vector<256x256xbf16>, vector<8x256xf32> -> vector<8x256xf32>
    %c0_10 = arith.constant 0 : index
    %c0_11 = arith.constant 0 : index
    %14 = vector.load %arg5[%c0_10, %c0_11] : memref<1x256xf32, #tpu.memory_space<vmem>>, vector<1x256xf32>
    %15 = vector.broadcast %14 : vector<1x256xf32> to vector<8x256xf32>
    %16 = arith.addf %13, %15 : vector<8x256xf32>
    %cst_12 = arith.constant 0.000000e+00 : f32
    %17 = vector.broadcast %cst_12 : f32 to vector<8x256xf32>
    %18 = arith.maximumf %16, %17 : vector<8x256xf32>
    %19 = arith.truncf %18 : vector<8x256xf32> to vector<8x256xbf16>
    %c0_13 = arith.constant 0 : index
    %c0_14 = arith.constant 0 : index
    %20 = vector.load %arg6[%c0_13, %c0_14] : memref<256x256xbf16, #tpu.memory_space<vmem>>, vector<256x256xbf16>
    %cst_15 = arith.constant dense<0.000000e+00> : vector<8x256xf32>
    %21 = tpu.matmul %19, %20, %cst_15 {dimension_numbers = #tpu.dot_dimension_numbers<[1], [0], [0], [1], [0, 0, 1, 1], [], []>} : vector<8x256xbf16>, vector<256x256xbf16>, vector<8x256xf32> -> vector<8x256xf32>
    %c0_16 = arith.constant 0 : index
    %c0_17 = arith.constant 0 : index
    %22 = vector.load %arg7[%c0_16, %c0_17] : memref<1x256xf32, #tpu.memory_space<vmem>>, vector<1x256xf32>
    %23 = vector.broadcast %22 : vector<1x256xf32> to vector<8x256xf32>
    %24 = arith.addf %21, %23 : vector<8x256xf32>
    %cst_18 = arith.constant 0.000000e+00 : f32
    %25 = vector.broadcast %cst_18 : f32 to vector<8x256xf32>
    %26 = arith.maximumf %24, %25 : vector<8x256xf32>
    %27 = arith.truncf %26 : vector<8x256xf32> to vector<8x256xbf16>
    %c0_19 = arith.constant 0 : index
    %c0_20 = arith.constant 0 : index
    %28 = vector.load %arg8[%c0_19, %c0_20] : memref<256x8xbf16, #tpu.memory_space<vmem>>, vector<256x8xbf16>
    %cst_21 = arith.constant dense<0.000000e+00> : vector<8x8xf32>
    %29 = tpu.matmul %27, %28, %cst_21 {dimension_numbers = #tpu.dot_dimension_numbers<[1], [0], [0], [1], [0, 0, 1, 1], [], []>} : vector<8x256xbf16>, vector<256x8xbf16>, vector<8x8xf32> -> vector<8x8xf32>
    %c0_22 = arith.constant 0 : index
    %c0_23 = arith.constant 0 : index
    %30 = vector.load %arg9[%c0_22, %c0_23] : memref<1x8xf32, #tpu.memory_space<vmem>>, vector<1x8xf32>
    %31 = vector.broadcast %30 : vector<1x8xf32> to vector<8x8xf32>
    %32 = arith.addf %29, %31 : vector<8x8xf32>
    %c0_24 = arith.constant 0 : index
    %c0_25 = arith.constant 0 : index
    %33 = vector.load %arg10[%c0_24, %c0_25] : memref<8x8xf32, #tpu.memory_space<vmem>>, vector<8x8xf32>
    tpu.vector_store %arg10[%c0_24, %c0_25], %32 {strides = array<i32>} : memref<8x8xf32, #tpu.memory_space<vmem>>, vector<8x8xf32>,
    return
  }
  func.func @transform_0(%arg0: i32) -> (i32, i32) {
    %c0_i32 = arith.constant 0 : i32
    %c0_i32_0 = arith.constant 0 : i32
    return %arg0, %c0_i32 : i32, i32
  }
  func.func @transform_1(%arg0: i32) -> (i32, i32) {
    %c0_i32 = arith.constant 0 : i32
    %c0_i32_0 = arith.constant 0 : i32
    %c0_i32_1 = arith.constant 0 : i32
    return %c0_i32, %c0_i32_0 : i32, i32
  }
  func.func @transform_2(%arg0: i32) -> (i32, i32) {
    %c0_i32 = arith.constant 0 : i32
    %c0_i32_0 = arith.constant 0 : i32
    %c0_i32_1 = arith.constant 0 : i32
    return %c0_i32, %c0_i32_0 : i32, i32
  }
  func.func @transform_3(%arg0: i32) -> (i32, i32) {
    %c0_i32 = arith.constant 0 : i32
    %c0_i32_0 = arith.constant 0 : i32
    %c0_i32_1 = arith.constant 0 : i32
    return %c0_i32, %c0_i32_0 : i32, i32
  }
  func.func @transform_4(%arg0: i32) -> (i32, i32) {
    %c0_i32 = arith.constant 0 : i32
    %c0_i32_0 = arith.constant 0 : i32
    %c0_i32_1 = arith.constant 0 : i32
    return %c0_i32, %c0_i32_0 : i32, i32
  }
  func.func @transform_5(%arg0: i32) -> (i32, i32) {
    %c0_i32 = arith.constant 0 : i32
    %c0_i32_0 = arith.constant 0 : i32
    %c0_i32_1 = arith.constant 0 : i32
    return %c0_i32, %c0_i32_0 : i32, i32
  }
  func.func @transform_6(%arg0: i32) -> (i32, i32) {
    %c0_i32 = arith.constant 0 : i32
    %c0_i32_0 = arith.constant 0 : i32
    %c0_i32_1 = arith.constant 0 : i32
    return %c0_i32, %c0_i32_0 : i32, i32
  }
  func.func @transform_7(%arg0: i32) -> (i32, i32) {
    %c0_i32 = arith.constant 0 : i32
    %c0_i32_0 = arith.constant 0 : i32
    %c0_i32_1 = arith.constant 0 : i32
    return %c0_i32, %c0_i32_0 : i32, i32
  }
  func.func @transform_8(%arg0: i32) -> (i32, i32) {
    %c0_i32 = arith.constant 0 : i32
    %c0_i32_0 = arith.constant 0 : i32
    %c0_i32_1 = arith.constant 0 : i32
    return %c0_i32, %c0_i32_0 : i32, i32
  }
  func.func @transform_9(%arg0: i32) -> (i32, i32) {
    %c0_i32 = arith.constant 0 : i32
    %c0_i32_0 = arith.constant 0 : i32
    return %arg0, %c0_i32 : i32, i32
  }
}

</mosaic_0001>

<bundles_post_ra>
// kernel: tpu_custom_call.1
= control target key start
LH: loop header
LB: loop body
LE: loop exit
PB: predicated region body
PF: predicated region fallthrough
CT: control target
= control target key end

     0   :  { %14 = vsyncpa [#allocation3], 0  ;;  %s1323_s0 = inlined_call_operand.vmem [shape: f32[8,22], index: 0, kind: input, shape index: {}]   ;;  %s1324_s1 = inlined_call_operand.vmem [shape: bf16[32,256], index: 1, kind: input, shape index: {}]   ;;  %s1325_s2 = inlined_call_operand.vmem [shape: f32[1,256], index: 2, kind: input, shape index: {}]   ;;  %s1326_s3 = inlined_call_operand.hbm [shape: bf16[256,256], index: 3, kind: input, shape index: {}]   ;;  %s1327_s4 = inlined_call_operand.vmem [shape: f32[1,256], index: 4, kind: input, shape index: {}]   ;;  %s1328_s5 = inlined_call_operand.hbm [shape: bf16[256,256], index: 5, kind: input, shape index: {}]   ;;  %s1329_s6 = inlined_call_operand.vmem [shape: f32[1,256], index: 6, kind: input, shape index: {}]   ;;  %s1330_s7 = inlined_call_operand.vmem [shape: bf16[256,8], index: 7, kind: input, shape index: {}]   ;;  %s1331_s8 = inlined_call_operand.vmem [shape: f32[1,8], index: 8, kind: input, shape index: {}]   ;;  %s1332_s9 = inlined_call_operand.hbm [shape: f32[8,8], index: 9, kind: output, shape index: {}]  }
   0x1   :  { %15 = vsyncpa [#allocation6], 0 }
   0x2   :  { %16 = vsyncpa [#allocation4], 0  ;;  %s1146_s30 = smov [#allocation2]   ;;  %s1074_s13 = scalar_lea.hbm %s1326_s3, 4096 }
   0x3   :  { %s28_s10 = sshll.u32 %s1146_s30, 4  ;;  %p1075_p0 = scmp.ne.s32.totalorder %s1326_s3, %s1074_s13  ;;  %s29_s10 = int_to_ptr.vmem [resolvable:$true] %s28_s10 }
   0x4   :  { %p1078_p1 = scmp.lt.u32.totalorder %s1074_s13, %s1326_s3 }
   0x6   :  { %p1080_p2 = pnand %p1078_p1, %p1075_p0 }
   0x8   :  { %1083 = shalt.err (!%p1080_p2)
}
   0x9   :  { %s1084_s18 = scalar_lea.vmem %s29_s10, 4096  ;;  %p1089_p4 = scmp.lt.s32.totalorder %s29_s10, %s29_s10 }
   0xa   :  { %p1085_p3 = scmp.ne.s32.totalorder %s29_s10, %s1084_s18  ;;  %p1090_p5 = scmp.lt.s32.totalorder %s1084_s18, %s1084_s18 }
   0xc   :  { %p1091_p6 = por %p1090_p5, %p1089_p4 }
   0xe   :  { %p1092_p7 = pnand %p1091_p6, %p1085_p3 }
  0x10   :  { %1095 = shalt.err (!%p1092_p7)
}
  0x11   :  { %s1147_s19 = smov 128   ;;  %s1148_s20 = smov 8  }
  0x12   :  { %34 = dma.hbm_to_vmem [thread:$0]  %s1326_s3, 4096, %s29_s10, [#allocation3], %s1147_s19, %s1147_s19, %s1148_s20  }
  0x13   :  { %s1149_s23 = smov [#allocation5]   ;;  %s1096_s27 = scalar_lea.hbm %s1328_s5, 4096 }
  0x14   :  { %s42_s24 = sshll.u32 %s1149_s23, 4  ;;  %p1097_p8 = scmp.ne.s32.totalorder %s1328_s5, %s1096_s27  ;;  %s43_s24 = int_to_ptr.vmem [resolvable:$true] %s42_s24 }
  0x15   :  { %p1100_p9 = scmp.lt.u32.totalorder %s1096_s27, %s1328_s5 }
  0x17   :  { %p1102_p10 = pnand %p1100_p9, %p1097_p8 }
  0x19   :  { %1105 = shalt.err (!%p1102_p10)
}
  0x1a   :  { %s1106_s12 = scalar_lea.vmem %s43_s24, 4096  ;;  %p1111_p12 = scmp.lt.s32.totalorder %s43_s24, %s43_s24 }
  0x1b   :  { %p1107_p11 = scmp.ne.s32.totalorder %s43_s24, %s1106_s12  ;;  %p1112_p13 = scmp.lt.s32.totalorder %s1106_s12, %s1106_s12 }
  0x1d   :  { %p1113_p0 = por %p1112_p13, %p1111_p12 }
  0x1f   :  { %p1114_p1 = pnand %p1113_p0, %p1107_p11 }
  0x21   :  { %1117 = shalt.err (!%p1114_p1)
}
  0x22   :  { %48 = dma.hbm_to_vmem [thread:$0]  %s1328_s5, 4096, %s43_s24, [#allocation6], %s1147_s19, %s1147_s19, %s1148_s20  }
  0x23   :  { %1140 = dma.done.wait [#allocation3], 4096  }
  0x24   :  { %1141 = vsyncadd [#allocation3], 4294963200 }
  0x25   :  { %1142 = dma.done.wait [#allocation6], 4096  }
  0x26   :  { %1143 = vsyncadd [#allocation6], 4294963200  ;;  %v1150_v0 = vmov 0   ;;  %v956_v1 = vld [vmem:[%s1324_s1 + $0x4] ss:$8 sps:$4 sm:$0xff]   ;;  %vm63_vm0 = vcmask 179200  }
  0x27   :  { %138 = vmatprep.mubr.bf16.mxu0 %v1150_v0  ;;  %v958_v2 = vld [vmem:[%s1324_s1] ss:$8 sps:$4 sm:$0xff]   ;;  %106 = vmatprep.subr.bf16.mxu0 %v956_v1  ;;  %v959_v3 = vld [vmem:[%s1324_s1 + $0x14] ss:$8 sps:$4 sm:$0xff]   ;;  %v961_v4 = vld [vmem:[%s1324_s1 + $0x10] ss:$8 sps:$4 sm:$0xff]  }
  0x28   :  { %v62_v5 = vld [vmem:[%s1323_s0] sm:$0xff]  ;;  %107 = vmatpush1.bf16.msra.mxu0 %v958_v2  ;;  %v965_v9 = vld [vmem:[#allocation2 + $0x14] ss:$8 sps:$4 sm:$0xff]   ;;  %v967_v11 = vld [vmem:[#allocation2 + $0x10] ss:$8 sps:$4 sm:$0xff]   ;;  %vm102_vm1 = vcmask 261120  }
  0x29   :  { %v64_v6 = vsel %vm63_vm0, %v62_v5, 0.0  ;;  %v962_v7 = vld [vmem:[#allocation2 + $0x4] ss:$8 sps:$4 sm:$0xff]   ;;  %108 = vmatprep.subr.bf16.mxu0 %v959_v3  ;;  %v964_v8 = vld [vmem:[#allocation2] ss:$8 sps:$4 sm:$0xff]   ;;  %vm824_vm2 = vcmask 64512  }
  0x2a   :  { %355 = vmatprep.subr.bf16.mxu1 %v962_v7  ;;  %v65_v10 = vpack.c.bf16 %v64_v6, %v64_v6  ;;  %v968_v12 = vld [vmem:[#allocation2 + $0x24] ss:$8 sps:$4 sm:$0xff]   ;;  %v970_v13 = vld [vmem:[#allocation2 + $0x20] ss:$8 sps:$4 sm:$0xff]   ;;  %v971_v14 = vld [vmem:[#allocation2 + $0x34] ss:$8 sps:$4 sm:$0xff]  }
  0x2b   :  { %356 = vmatpush1.bf16.msra.mxu1 %v964_v8  ;;  %v973_v15 = vld [vmem:[#allocation2 + $0x30] ss:$8 sps:$4 sm:$0xff]   ;;  %v974_v16 = vld [vmem:[#allocation2 + $0x44] ss:$8 sps:$4 sm:$0xff]   ;;  %v976_v17 = vld [vmem:[#allocation2 + $0x40] ss:$8 sps:$4 sm:$0xff]  }
  0x2c   :  { %109 = vmatpush1.bf16.msra.mxu0 %v961_v4  ;;  %357 = vmatprep.subr.bf16.mxu1 %v965_v9  ;;  %v977_v18 = vld [vmem:[#allocation2 + $0x54] ss:$8 sps:$4 sm:$0xff]   ;;  %v979_v19 = vld [vmem:[#allocation2 + $0x50] ss:$8 sps:$4 sm:$0xff]   ;;  %v980_v20 = vld [vmem:[#allocation2 + $0x64] ss:$8 sps:$4 sm:$0xff]   ;;  %v72_v4 = vlaneseq }
  0x2d   :  { %v982_v21 = vld [vmem:[#allocation2 + $0x60] ss:$8 sps:$4 sm:$0xff]   ;;  %v983_v22 = vld [vmem:[#allocation2 + $0x74] ss:$8 sps:$4 sm:$0xff]   ;;  %v985_v23 = vld [vmem:[#allocation2 + $0x70] ss:$8 sps:$4 sm:$0xff]  }
  0x2e   :  { %v986_v24 = vld [vmem:[#allocation2 + $0x84] ss:$8 sps:$4 sm:$0xff]   ;;  %v988_v25 = vld [vmem:[#allocation2 + $0x80] ss:$8 sps:$4 sm:$0xff]   ;;  %v989_v26 = vld [vmem:[#allocation2 + $0x94] ss:$8 sps:$4 sm:$0xff]  }
  0x2f   :  { %846 = vmatmul.mubr.msk.bf16.vlgmr.msra.gmra.mrb[0].mxu0 %vm102_vm1, %v65_v10  ;;  %358 = vmatpush1.bf16.msra.mxu1 %v967_v11  ;;  %v991_v27 = vld [vmem:[#allocation2 + $0x90] ss:$8 sps:$4 sm:$0xff]   ;;  %v992_v28 = vld [vmem:[#allocation2 + $0xa4] ss:$8 sps:$4 sm:$0xff]   ;;  %v994_v29 = vld [vmem:[#allocation2 + $0xa0] ss:$8 sps:$4 sm:$0xff]  }
  0x30   :  { %359 = vmatprep.subr.bf16.mxu1 %v968_v12  ;;  %v995_v30 = vld [vmem:[#allocation2 + $0xb4] ss:$8 sps:$4 sm:$0xff]   ;;  %v997_v31 = vld [vmem:[#allocation2 + $0xb0] ss:$8 sps:$4 sm:$0xff]   ;;  %v998_v32 = vld [vmem:[#allocation2 + $0xc4] ss:$8 sps:$4 sm:$0xff]  }
  0x31   :  { %v1000_v33 = vld [vmem:[#allocation2 + $0xc0] ss:$8 sps:$4 sm:$0xff]   ;;  %v1001_v34 = vld [vmem:[#allocation2 + $0xd4] ss:$8 sps:$4 sm:$0xff]   ;;  %v1003_v35 = vld [vmem:[#allocation2 + $0xd0] ss:$8 sps:$4 sm:$0xff]  }
  0x32   :  { %v1004_v36 = vld [vmem:[#allocation2 + $0xe4] ss:$8 sps:$4 sm:$0xff]   ;;  %v1006_v37 = vld [vmem:[#allocation2 + $0xe0] ss:$8 sps:$4 sm:$0xff]   ;;  %v1007_v38 = vld [vmem:[#allocation2 + $0xf4] ss:$8 sps:$4 sm:$0xff]  }
  0x33   :  { %360 = vmatpush1.bf16.msra.mxu1 %v970_v13  ;;  %v1009_v39 = vld [vmem:[#allocation2 + $0xf0] ss:$8 sps:$4 sm:$0xff]   ;;  %v1010_v40 = vld [vmem:[#allocation5] ss:$8 sps:$4 sm:$0xff]   ;;  %v1012_v41 = vld [vmem:[#allocation5 + $0x4] ss:$8 sps:$4 sm:$0xff]  }
  0x34   :  { %361 = vmatprep.subr.bf16.mxu1 %v971_v14  ;;  %v1015_v42 = vld [vmem:[#allocation5 + $0x14] ss:$8 sps:$4 sm:$0xff]   ;;  %604 = vmatprep.subr.bf16.mxu0 %v1012_v41  ;;  %v1013_v43 = vld [vmem:[#allocation5 + $0x10] ss:$8 sps:$4 sm:$0xff]   ;;  %v1018_v44 = vld [vmem:[#allocation5 + $0x24] ss:$8 sps:$4 sm:$0xff]  }
  0x35   :  { %605 = vmatpush1.bf16.msra.mxu0 %v1010_v40  ;;  %v1016_v45 = vld [vmem:[#allocation5 + $0x20] ss:$8 sps:$4 sm:$0xff]   ;;  %v1021_v46 = vld [vmem:[#allocation5 + $0x34] ss:$8 sps:$4 sm:$0xff]   ;;  %v1019_v47 = vld [vmem:[#allocation5 + $0x30] ss:$8 sps:$4 sm:$0xff]  }
  0x36   :  { %606 = vmatprep.subr.bf16.mxu0 %v1015_v42  ;;  %v1024_v48 = vld [vmem:[#allocation5 + $0x44] ss:$8 sps:$4 sm:$0xff]   ;;  %v1022_v49 = vld [vmem:[#allocation5 + $0x40] ss:$8 sps:$4 sm:$0xff]   ;;  %v1027_v50 = vld [vmem:[#allocation5 + $0x54] ss:$8 sps:$4 sm:$0xff]  }
  0x37   :  { %362 = vmatpush1.bf16.msra.mxu1 %v973_v15  ;;  %v1025_v51 = vld [vmem:[#allocation5 + $0x50] ss:$8 sps:$4 sm:$0xff]   ;;  %v1030_v52 = vld [vmem:[#allocation5 + $0x64] ss:$8 sps:$4 sm:$0xff]   ;;  %v1028_v53 = vld [vmem:[#allocation5 + $0x60] ss:$8 sps:$4 sm:$0xff]  }
  0x38   :  { %363 = vmatprep.subr.bf16.mxu1 %v974_v16  ;;  %v1033_v54 = vld [vmem:[#allocation5 + $0x74] ss:$8 sps:$4 sm:$0xff]   ;;  %v1031_v55 = vld [vmem:[#allocation5 + $0x70] ss:$8 sps:$4 sm:$0xff]   ;;  %v1036_v56 = vld [vmem:[#allocation5 + $0x84] ss:$8 sps:$4 sm:$0xff]  }
  0x39   :  { %607 = vmatpush1.bf16.msra.mxu0 %v1013_v43  ;;  %v1034_v57 = vld [vmem:[#allocation5 + $0x80] ss:$8 sps:$4 sm:$0xff]   ;;  %v1039_v58 = vld [vmem:[#allocation5 + $0x94] ss:$8 sps:$4 sm:$0xff]   ;;  %v1037_v59 = vld [vmem:[#allocation5 + $0x90] ss:$8 sps:$4 sm:$0xff]  }
  0x3a   :  { %608 = vmatprep.subr.bf16.mxu0 %v1018_v44  ;;  %v1042_v60 = vld [vmem:[#allocation5 + $0xa4] ss:$8 sps:$4 sm:$0xff]   ;;  %v1040_v61 = vld [vmem:[#allocation5 + $0xa0] ss:$8 sps:$4 sm:$0xff]   ;;  %v1045_v62 = vld [vmem:[#allocation5 + $0xb4] ss:$8 sps:$4 sm:$0xff]  }
  0x3b   :  { %364 = vmatpush1.bf16.msra.mxu1 %v976_v17  ;;  %v1043_v63 = vld [vmem:[#allocation5 + $0xb0] ss:$8 sps:$4 sm:$0xff]   ;;  %v1048_v0 = vld [vmem:[#allocation5 + $0xc4] ss:$8 sps:$4 sm:$0xff]   ;;  %v1046_v1 = vld [vmem:[#allocation5 + $0xc0] ss:$8 sps:$4 sm:$0xff]  }
  0x3c   :  { %365 = vmatprep.subr.bf16.mxu1 %v977_v18  ;;  %v1051_v2 = vld [vmem:[#allocation5 + $0xd4] ss:$8 sps:$4 sm:$0xff]   ;;  %v1049_v3 = vld [vmem:[#allocation5 + $0xd0] ss:$8 sps:$4 sm:$0xff]   ;;  %v73_v5 = vshrl.u32 %v72_v4, 7 }
  0x3d   :  { %609 = vmatpush1.bf16.msra.mxu0 %v1016_v45  ;;  %v70_v7 = vld [vmem:[%s1325_s2] sm:$0x3] }
  0x3e   :  { %610 = vmatprep.subr.bf16.mxu0 %v1021_v46  ;;  %v1241_v6 = vsub.s32 0, %v73_v5  ;;  %v1246_v8 = vsub.s32 1, %v73_v5  ;;  %v911_v4 = vld [vmem:[%s1331_s8] ss:$0 sm:$0xff] }
  0x3f   :  { %366 = vmatpush1.bf16.msra.mxu1 %v979_v19 }
  0x40   :  { %367 = vmatprep.subr.bf16.mxu1 %v980_v20  ;;  %v75_v9 = vrot.slane %v70_v7, %v1241_v6  ;;  %v79_v10 = vrot.slane %v70_v7, %v1246_v8 }
  0x41   :  { %611 = vmatpush1.bf16.msra.mxu0 %v1019_v47 }
  0x42   :  { %612 = vmatprep.subr.bf16.mxu0 %v1024_v48 }
  0x43   :  { %368 = vmatpush1.bf16.msra.mxu1 %v982_v21  ;;  %v1054_v21 = vld [vmem:[#allocation5 + $0xe4] ss:$8 sps:$4 sm:$0xff]  }
  0x44   :  { %369 = vmatprep.subr.bf16.mxu1 %v983_v22  ;;  %v1052_v22 = vld [vmem:[#allocation5 + $0xe0] ss:$8 sps:$4 sm:$0xff]  }
  0x45   :  { %613 = vmatpush1.bf16.msra.mxu0 %v1022_v49 }
  0x46   :  { %614 = vmatprep.subr.bf16.mxu0 %v1027_v50  ;;  %v1070_v50 = vld [vmem:[%s1330_s7 + $0x70] sm:$0xff]  }
  0x47   :  { %370 = vmatpush1.bf16.msra.mxu1 %v985_v23  ;;  %v1057_v23 = vld [vmem:[#allocation5 + $0xf4] ss:$8 sps:$4 sm:$0xff]  }
  0x48   :  { %371 = vmatprep.subr.bf16.mxu1 %v986_v24  ;;  %v1055_v24 = vld [vmem:[#allocation5 + $0xf0] ss:$8 sps:$4 sm:$0xff]  }
  0x49   :  { %615 = vmatpush1.bf16.msra.mxu0 %v1025_v51  ;;  %v1071_v51 = vld [vmem:[%s1330_s7 + $0x30] sm:$0xff]  }
  0x4a   :  { %616 = vmatprep.subr.bf16.mxu0 %v1030_v52  ;;  %v1072_v52 = vld [vmem:[%s1330_s7 + $0x78] sm:$0xff]  }
  0x4b   :  { %372 = vmatpush1.bf16.msra.mxu1 %v988_v25  ;;  %v1058_v25 = vld [vmem:[%s1330_s7 + $0x40] sm:$0xff]  }
  0x4c   :  { %373 = vmatprep.subr.bf16.mxu1 %v989_v26  ;;  %v1059_v26 = vld [vmem:[%s1330_s7] sm:$0xff]  }
  0x4d   :  { %617 = vmatpush1.bf16.msra.mxu0 %v1028_v53  ;;  %v1073_v53 = vld [vmem:[%s1330_s7 + $0x38] sm:$0xff]  }
  0x4e   :  { %618 = vmatprep.subr.bf16.mxu0 %v1033_v54  ;;  %v432_v54 = vld [vmem:[%s1329_s6] sm:$0x3]  ;;  %s1151_s6 = smov [#allocation7]  }
  0x4f   :  { %374 = vmatpush1.bf16.msra.mxu1 %v991_v27  ;;  %v1060_v27 = vld [vmem:[%s1330_s7 + $0x48] sm:$0xff]   ;;  %s832_s11 = sshll.u32 %s1151_s6, 4  ;;  %s833_s11 = int_to_ptr.vmem [resolvable:$true] %s832_s11 }
  0x50   :  { %375 = vmatprep.subr.bf16.mxu1 %v992_v28  ;;  %v1061_v28 = vld [vmem:[%s1330_s7 + $0x8] sm:$0xff]   ;;  %s1118_s12 = scalar_lea.vmem %s833_s11, 128  ;;  %p1123_p3 = scmp.lt.s32.totalorder %s833_s11, %s833_s11 }
  0x51   :  { %619 = vmatpush1.bf16.msra.mxu0 %v1031_v55  ;;  %v437_v55 = vrot.slane %v432_v54, %v1241_v6  ;;  %p1119_p2 = scmp.ne.s32.totalorder %s833_s11, %s1118_s12  ;;  %p1124_p4 = scmp.lt.s32.totalorder %s1118_s12, %s1118_s12 }
  0x52   :  { %620 = vmatprep.subr.bf16.mxu0 %v1036_v56  ;;  %v441_v56 = vrot.slane %v432_v54, %v1246_v8 }
  0x53   :  { %376 = vmatpush1.bf16.msra.mxu1 %v994_v29  ;;  %v1062_v29 = vld [vmem:[%s1330_s7 + $0x50] sm:$0xff]   ;;  %p1125_p5 = por %p1124_p4, %p1123_p3 }
  0x54   :  { %377 = vmatprep.subr.bf16.mxu1 %v995_v30  ;;  %v1063_v30 = vld [vmem:[%s1330_s7 + $0x10] sm:$0xff]  }
  0x55   :  { %621 = vmatpush1.bf16.msra.mxu0 %v1034_v57  ;;  %p1126_p6 = pnand %p1125_p5, %p1119_p2 }
  0x56   :  { %622 = vmatprep.subr.bf16.mxu0 %v1039_v58 }
  0x57   :  { %378 = vmatpush1.bf16.msra.mxu1 %v997_v31  ;;  %v1064_v31 = vld [vmem:[%s1330_s7 + $0x58] sm:$0xff]  }
  0x58   :  { %379 = vmatprep.subr.bf16.mxu1 %v998_v32  ;;  %v1065_v32 = vld [vmem:[%s1330_s7 + $0x18] sm:$0xff]  }
  0x59   :  { %623 = vmatpush1.bf16.msra.mxu0 %v1037_v59 }
  0x5a   :  { %624 = vmatprep.subr.bf16.mxu0 %v1042_v60 }
  0x5b   :  { %380 = vmatpush1.bf16.msra.mxu1 %v1000_v33  ;;  %v1066_v33 = vld [vmem:[%s1330_s7 + $0x60] sm:$0xff]  }
  0x5c   :  { %381 = vmatprep.subr.bf16.mxu1 %v1001_v34  ;;  %v1067_v34 = vld [vmem:[%s1330_s7 + $0x20] sm:$0xff]  }
  0x5d   :  { %625 = vmatpush1.bf16.msra.mxu0 %v1040_v61 }
  0x5e   :  { %626 = vmatprep.subr.bf16.mxu0 %v1045_v62 }
  0x5f   :  { %382 = vmatpush1.bf16.msra.mxu1 %v1003_v35  ;;  %v1068_v35 = vld [vmem:[%s1330_s7 + $0x68] sm:$0xff]  }
  0x60   :  { %383 = vmatprep.subr.bf16.mxu1 %v1004_v36  ;;  %v1069_v36 = vld [vmem:[%s1330_s7 + $0x28] sm:$0xff]  }
  0x61   :  { %627 = vmatpush1.bf16.msra.mxu0 %v1043_v63 }
  0x62   :  { %628 = vmatprep.subr.bf16.mxu0 %v1048_v0 }
  0x63   :  { %384 = vmatpush1.bf16.msra.mxu1 %v1006_v37  ;;  %v183_v37 = vld [vmem:[%s1327_s4] sm:$0x3] }
  0x64   :  { %385 = vmatprep.subr.bf16.mxu1 %v1007_v38  ;;  %v188_v38 = vrot.slane %v183_v37, %v1241_v6 }
  0x65   :  { %629 = vmatpush1.bf16.msra.mxu0 %v1046_v1 }
  0x66   :  { %630 = vmatprep.subr.bf16.mxu0 %v1051_v2 }
  0x67   :  { %386 = vmatpush1.bf16.msra.mxu1 %v1009_v39  ;;  %v192_v39 = vrot.slane %v183_v37, %v1246_v8 }
  0x68   :  { %928 = vmatprep.subr.bf16.mxu1 %v1058_v25 }
  0x69   :  { %631 = vmatpush1.bf16.msra.mxu0 %v1049_v3 }
  0x6a   :  { %632 = vmatprep.subr.bf16.mxu0 %v1054_v21 }
  0x6d   :  { %633 = vmatpush1.bf16.msra.mxu0 %v1052_v22 }
  0x6e   :  { %634 = vmatprep.subr.bf16.mxu0 %v1057_v23 }
  0x71   :  { %635 = vmatpush1.bf16.msra.mxu0 %v1055_v24 }
 0x102   :  { %v140_v11 = vpop.f32.mrb[0].mxu0 }
 0x103   :  { %v141_v12 = vadd.f32 %v140_v11, %v75_v9  ;;  %v142_v13 = vpop.f32.mrb[1].mxu0 }
 0x104   :  { %v143_v14 = vadd.f32 %v142_v13, %v79_v10  ;;  %v144_v15 = vpop.f32.mrb[2].mxu0 }
 0x105   :  { %v147_v16 = vmax.f32 %v141_v12, 0.0  ;;  %v145_v17 = vpop.f32.mrb[3].mxu0 }
 0x106   :  { %v148_v18 = vmax.f32 %v143_v14, 0.0 }
 0x107   :  { %v149_v20 = vpack.c.bf16 %v147_v16, %v147_v16 }
 0x108   :  { %v150_v19 = vpack.c.bf16 %v148_v18, %v148_v18 }
 0x10a   :  { %387 = vmatprep.mubr.bf16.mxu1 %v150_v19 }
 0x10b   :  { %388 = vmatmul.mubr.bf16.vlgmr.msra.gmra.mrb[0].mxu1 %v149_v20 }
 0x10c   :  { %929 = vmatpush3.bf16.msra.mxu1 %v1059_v26 }
 0x10d   :  { %930 = vmatprep.subr.bf16.mxu1 %v1060_v27 }
 0x110   :  { %931 = vmatpush3.bf16.msra.mxu1 %v1061_v28 }
 0x111   :  { %932 = vmatprep.subr.bf16.mxu1 %v1062_v29 }
 0x114   :  { %933 = vmatpush3.bf16.msra.mxu1 %v1063_v30 }
 0x115   :  { %934 = vmatprep.subr.bf16.mxu1 %v1064_v31 }
 0x118   :  { %935 = vmatpush3.bf16.msra.mxu1 %v1065_v32 }
 0x119   :  { %936 = vmatprep.subr.bf16.mxu1 %v1066_v33 }
 0x11c   :  { %937 = vmatpush3.bf16.msra.mxu1 %v1067_v34 }
 0x11d   :  { %938 = vmatprep.subr.bf16.mxu1 %v1068_v35 }
 0x120   :  { %939 = vmatpush3.bf16.msra.mxu1 %v1069_v36 }
 0x121   :  { %940 = vmatprep.subr.bf16.mxu1 %v1070_v50 }
 0x124   :  { %941 = vmatpush3.bf16.msra.mxu1 %v1071_v51 }
 0x125   :  { %942 = vmatprep.subr.bf16.mxu1 %v1072_v52 }
 0x128   :  { %943 = vmatpush3.bf16.msra.mxu1 %v1073_v53 }
 0x1de   :  { %v389_v40 = vpop.f32.mrb[0].mxu1 }
 0x1df   :  { %v390_v41 = vadd.f32 %v389_v40, %v188_v38  ;;  %v391_v42 = vpop.f32.mrb[1].mxu1 }
 0x1e0   :  { %v392_v43 = vadd.f32 %v391_v42, %v192_v39  ;;  %v393_v44 = vpop.f32.mrb[2].mxu1 }
 0x1e1   :  { %v396_v45 = vmax.f32 %v390_v41, 0.0  ;;  %v394_v46 = vpop.f32.mrb[3].mxu1 }
 0x1e2   :  { %v397_v47 = vmax.f32 %v392_v43, 0.0 }
 0x1e3   :  { %v398_v49 = vpack.c.bf16 %v396_v45, %v396_v45 }
 0x1e4   :  { %v399_v48 = vpack.c.bf16 %v397_v47, %v397_v47 }
 0x1e6   :  { %636 = vmatprep.mubr.bf16.mxu0 %v399_v48 }
 0x1e7   :  { %637 = vmatmul.mubr.bf16.vlgmr.msra.gmra.mrb[4].mxu0 %v398_v49 }
 0x2ba   :  { %v638_v57 = vpop.f32.mrb[4].mxu0 }
 0x2bb   :  { %v639_v58 = vadd.f32 %v638_v57, %v437_v55  ;;  %v640_v59 = vpop.f32.mrb[5].mxu0 }
 0x2bc   :  { %v641_v60 = vadd.f32 %v640_v59, %v441_v56  ;;  %v642_v61 = vpop.f32.mrb[6].mxu0 }
 0x2bd   :  { %v645_v62 = vmax.f32 %v639_v58, 0.0  ;;  %v643_v63 = vpop.f32.mrb[7].mxu0 }
 0x2be   :  { %v646_v0 = vmax.f32 %v641_v60, 0.0 }
 0x2bf   :  { %v647_v2 = vpack.c.bf16 %v645_v62, %v645_v62 }
 0x2c0   :  { %v648_v1 = vpack.c.bf16 %v646_v0, %v646_v0 }
 0x2c2   :  { %816 = vmatprep.mubr.bf16.mxu1 %v648_v1 }
 0x2c3   :  { %817 = vmatmul.mubr.bf16.vlgmr.msra.gmra.mrb[4].mxu1 %v647_v2 }
 0x396   :  { %v944_v3 = vpop.f32.mrb[4].mxu1 }
 0x397   :  { %v945_v5 = vpop.f32.mrb[5].mxu1 }
 0x398   :  { %v946_v6 = vadd.f32 %v945_v5, %v944_v3  ;;  %v947_v7 = vpop.f32.mrb[6].mxu1 }
 0x399   :  { %v948_v8 = vpop.f32.mrb[7].mxu1 }
 0x39a   :  { %v819_v9 = vadd.f32 %v946_v6, %v911_v4 }
 0x39c   :  { %825 = vst.msk [vmem:[#allocation7] sm:$0xff] %vm824_vm2, %v819_v9 }
 0x39d   :  { %1129 = shalt.err (!%p1126_p6)
}
 0x39e   :  { %s1130_s8 = scalar_lea.hbm %s1332_s9, 128 }
 0x39f   :  { %p1131_p7 = scmp.ne.s32.totalorder %s1332_s9, %s1130_s8  ;;  %p1134_p8 = scmp.lt.u32.totalorder %s1130_s8, %s1332_s9 }
 0x3a1   :  { %p1136_p9 = pnand %p1134_p8, %p1131_p7 }
 0x3a3   :  { %1139 = shalt.err (!%p1136_p9)
}
 0x3a4   :  { %835 = dma.vmem_to_hbm [thread:$0]  %s833_s11, 128, %s1332_s9, [#allocation4]  }
 0x3a5   :  { %1144 = dma.done.wait [#allocation4], 128  }
 0x3a6   :  { %1145 = vsyncadd [#allocation4], 4294967168 }
 0x3a7   :  { %839 = vsyncpa [#allocation3], 1 }
 0x3a8   :  { %840 = vsyncpa [#allocation6], 1 }
 0x3a9   :  { %841 = vsyncpa [#allocation4], 1 }

</bundles_post_ra>
